<compile_context>
chip_gen: v7x
topology: tpu7x:2x2x1
jax: 0.10.0
libtpu: 0.0.40
codegen_flags: <defaults>
</compile_context>

<pallas_src>
import functools
import numpy as np
import jax
import jax.numpy as jnp
from jax import lax
from jax.experimental import pallas as pl
from jax.experimental.pallas import tpu as pltpu

FEAT_STRIDE = 2
N_CLASSES = 21  # 20 object classes + background


def _cdiv(a, b):
    return (a + b - 1) // b


def _ceil(x, m):
    return ((x + m - 1) // m) * m


def _vmem_limit_bytes():
    # Gate the scoped-VMEM request on the generation (v7x: 64 MiB physical VMEM
    # vs 128 MiB on v5e/v6e). Fall back to a universally safe 32 MiB.
    try:
        cap = pltpu.get_tpu_info().vmem_capacity_bytes
        return int(min(64 * 1024 * 1024, cap // 2))
    except Exception:
        return 32 * 1024 * 1024


_VMEM_LIMIT = _vmem_limit_bytes()


# ------------------------------------------------------------------
# Pre-padded / fused parameter preparation (done once, not per call)
# True K/N here are all < 128, so 128-lane padding already fills what the
# MXU can use; for layers with real K/N >= 256 pad to 256 on v6e/v7x.
# ------------------------------------------------------------------
def make_linear(w, b):
    """w:(K,N) f32 -> padded bf16 (Kp,Np); b:(N,) -> f32 (1,Np)."""
    w = jnp.asarray(w, jnp.float32)
    b = jnp.asarray(b, jnp.float32)
    K, N = w.shape
    Kp, Np = max(128, _ceil(K, 128)), max(128, _ceil(N, 128))
    w_p = jnp.zeros((Kp, Np), jnp.bfloat16).at[:K, :N].set(w.astype(jnp.bfloat16))
    b_p = jnp.zeros((1, Np), jnp.float32).at[0, :N].set(b)
    return {'w': w_p, 'b': b_p, 'k': K, 'n': N}


def make_conv(W, b):
    Cout, Cin, KH, KW = W.shape
    lin = make_linear(jnp.reshape(W, (Cout, Cin * KH * KW)).T, b)
    lin.update(kh=KH, kw=KW, cin=Cin, cout=Cout)
    return lin


def prepare_params(p):
    A = p['rpn_cls_w'].shape[0] // 2
    q = {'n_anchor': A}
    q['backbone'] = make_conv(p['bb_w'], p['bb_b'])
    q['rpn_conv'] = make_conv(p['rpn_conv_w'], p['rpn_conv_b'])
    # Fuse RPN cls + loc 1x1 convs into one matmul (N = 2A + 4A columns).
    w_rpn = jnp.concatenate([p['rpn_cls_w'], p['rpn_loc_w']], axis=0)   # (6A,Cmid,1,1)
    b_rpn = jnp.concatenate([p['rpn_cls_b'], p['rpn_loc_b']], axis=0)
    q['rpn_out'] = make_linear(jnp.reshape(w_rpn, (6 * A, -1)).T, b_rpn)
    q['fc1'] = make_linear(p['fc1_w'], p['fc1_b'])
    # Fuse head loc + cls heads into one matmul (N = 84 + 21 columns).
    w_head = jnp.concatenate([p['loc_w'], p['cls_w']], axis=1)          # (32, 105)
    b_head = jnp.concatenate([p['loc_b'], p['cls_b']], axis=0)
    q['head_out'] = make_linear(w_head, b_head)
    return q


# ------------------------------------------------------------------
# Row tiling: single full-extent block for small M; >=2 steps for larger M
# (keeps v7x's second TensorCore busy); TM up to 512 at very large M.
# ------------------------------------------------------------------
def _row_tiles(M, tm_max=512):
    if M <= 256:
        return M, 1
    tm = 256 if M <= 2048 else tm_max
    return tm, _cdiv(M, tm)


# ------------------------------------------------------------------
# Pallas kernel 1: matmul + bias (+ optional ReLU), M tiled with a grid
# ------------------------------------------------------------------
def _linear_kernel(a_ref, w_ref, b_ref, o_ref, *, relu):
    acc = jnp.dot(a_ref[...], w_ref[...], preferred_element_type=jnp.float32)
    acc = acc + b_ref[...]
    if relu:
        acc = jnp.maximum(acc, 0.0)
    o_ref[...] = acc.astype(o_ref.dtype)


def pallas_linear(a, lin, relu=False, out_dtype=jnp.float32):
    """a:(M,Kp) bf16 already padded to lin['w'].shape[0] -> (M,Np) out_dtype.

    Padded output lanes come out as exact relu(bias)=0 values, so padded
    activations can be chained directly into the next padded matmul."""
    M, Kp = a.shape
    w_p, b_p = lin['w'], lin['b']
    assert Kp == w_p.shape[0], (Kp, w_p.shape)
    Np = w_p.shape[1]
    TM, gm = _row_tiles(M)
    return pl.pallas_call(
        functools.partial(_linear_kernel, relu=relu),
        out_shape=jax.ShapeDtypeStruct((M, Np), out_dtype),
        grid=(gm,),
        in_specs=[
            pl.BlockSpec((TM, Kp), lambda i: (i, 0)),
            pl.BlockSpec((Kp, Np), lambda i: (0, 0)),   # resident weights
            pl.BlockSpec((1, Np), lambda i: (0, 0)),
        ],
        out_specs=pl.BlockSpec((TM, Np), lambda i: (i, 0)),
        compiler_params=pltpu.CompilerParams(
            dimension_semantics=("parallel",),
            vmem_limit_bytes=_VMEM_LIMIT),
    )(a, w_p, b_p)


# ------------------------------------------------------------------
# Pallas kernel 2: fused 2-layer MLP for the detection head
#   out = (relu(a @ W1 + b1)) @ W2 + b2   (hidden never leaves the kernel)
# ------------------------------------------------------------------
def _mlp2_kernel(a_ref, w1_ref, b1_ref, w2_ref, b2_ref, o_ref):
    h = jnp.dot(a_ref[...], w1_ref[...], preferred_element_type=jnp.float32)
    h = jnp.maximum(h + b1_ref[...], 0.0)
    acc = jnp.dot(h.astype(jnp.bfloat16), w2_ref[...],
                  preferred_element_type=jnp.float32)
    o_ref[...] = (acc + b2_ref[...]).astype(o_ref.dtype)


def pallas_mlp2(a, lin1, lin2, out_dtype=jnp.float32):
    M, K1p = a.shape
    w1, b1, w2, b2 = lin1['w'], lin1['b'], lin2['w'], lin2['b']
    assert K1p == w1.shape[0]
    N1p = w1.shape[1]
    K2p, N2p = w2.shape
    assert K2p == N1p, "fused head: hidden padding mismatch"
    TM, gm = _row_tiles(M)
    return pl.pallas_call(
        _mlp2_kernel,
        out_shape=jax.ShapeDtypeStruct((M, N2p), out_dtype),
        grid=(gm,),
        in_specs=[
            pl.BlockSpec((TM, K1p), lambda i: (i, 0)),
            pl.BlockSpec((K1p, N1p), lambda i: (0, 0)),
            pl.BlockSpec((1, N1p), lambda i: (0, 0)),
            pl.BlockSpec((K2p, N2p), lambda i: (0, 0)),
            pl.BlockSpec((1, N2p), lambda i: (0, 0)),
        ],
        out_specs=pl.BlockSpec((TM, N2p), lambda i: (i, 0)),
        compiler_params=pltpu.CompilerParams(
            dimension_semantics=("parallel",),
            vmem_limit_bytes=_VMEM_LIMIT),
    )(a, w1, b1, w2, b2)


# ------------------------------------------------------------------
# Pallas kernel 3: pairwise IoU (anchor rows tiled with a parallel grid)
# ------------------------------------------------------------------
def _iou_kernel(a_ref, bt_ref, o_ref):
    a = a_ref[...]                 # (TN, 4)  boxes as x1,y1,x2,y2
    bt = bt_ref[...]               # (8, Gp)  first 4 rows = x1,y1,x2,y2 of GT
    ax1, ay1, ax2, ay2 = a[:, 0:1], a[:, 1:2], a[:, 2:3], a[:, 3:4]
    bx1, by1, bx2, by2 = bt[0:1, :], bt[1:2, :], bt[2:3, :], bt[3:4, :]
    ix1 = jnp.maximum(ax1, bx1)
    iy1 = jnp.maximum(ay1, by1)
    ix2 = jnp.minimum(ax2, bx2)
    iy2 = jnp.minimum(ay2, by2)
    iw = jnp.maximum(ix2 - ix1, 0.0)
    ih = jnp.maximum(iy2 - iy1, 0.0)
    inter = iw * ih
    area_a = (ax2 - ax1) * (ay2 - ay1)
    area_b = (bx2 - bx1) * (by2 - by1)
    denom = jnp.maximum(area_a + area_b - inter, 1e-9)
    o_ref[...] = inter / denom


def pairwise_iou(boxes_a, boxes_b):
    """Returns a DEVICE array (N,G); callers reduce on-device (inside jit)."""
    a = jnp.asarray(boxes_a, jnp.float32)
    b = jnp.asarray(boxes_b, jnp.float32)
    N, G = a.shape[0], b.shape[0]
    Gp = max(128, _ceil(G, 128))
    Np8 = max(8, _ceil(N, 8))
    a_p = jnp.zeros((Np8, 4), jnp.float32).at[:N].set(a)     # tiny; fuses under jit
    bt_p = jnp.zeros((8, Gp), jnp.float32).at[:4, :G].set(b.T)
    TN, gn = _row_tiles(Np8)
    out = pl.pallas_call(
        _iou_kernel,
        out_shape=jax.ShapeDtypeStruct((Np8, Gp), jnp.float32),
        grid=(gn,),
        in_specs=[
            pl.BlockSpec((TN, 4), lambda i: (i, 0)),
            pl.BlockSpec((8, Gp), lambda i: (0, 0)),
        ],
        out_specs=pl.BlockSpec((TN, Gp), lambda i: (i, 0)),
        compiler_params=pltpu.CompilerParams(
            dimension_semantics=("parallel",),
            vmem_limit_bytes=_VMEM_LIMIT),
    )(a_p, bt_p)
    return out[:N, :G]


# ------------------------------------------------------------------
# Pallas kernel 4: masked cross-entropy + smooth-L1 reduction
# (shared by RPN loss and Fast-RCNN loss); lane-dense (1,128) output
# ------------------------------------------------------------------
def _ce_smoothl1_kernel(cls_ref, tcls_ref, loc_ref, tloc_ref, o_ref):
    cls = cls_ref[...]                       # (Np, Cp) logits, pads = -1e30
    tcls = tcls_ref[...]                     # (Np, 1) int32 labels (-1 = ignore/pad)
    valid = tcls >= 0
    pos = tcls > 0
    # cross entropy per row (padded class lanes hold -1e30 -> exact logsumexp)
    m = jnp.max(cls, axis=1, keepdims=True)
    lse = jnp.log(jnp.sum(jnp.exp(cls - m), axis=1, keepdims=True)) + m
    col = lax.broadcasted_iota(jnp.int32, cls.shape, 1)
    picked = jnp.sum(jnp.where(col == tcls, cls, 0.0), axis=1, keepdims=True)
    ce = lse - picked
    ce_sum = jnp.sum(jnp.where(valid, ce, 0.0))
    valid_cnt = jnp.sum(valid.astype(jnp.float32))
    # smooth-L1-ish loc loss (strict inequalities: matches the reference formula)
    x = jnp.abs(tloc_ref[...] - loc_ref[...])
    hub = jnp.where(x < 0.5, 0.5 * x * x, 0.0) + jnp.where(x > 0.5, x - 0.5, 0.0)
    loc_sum = jnp.sum(jnp.where(pos, hub, 0.0))
    pos_cnt = jnp.sum(pos.astype(jnp.float32))
    lane = lax.broadcasted_iota(jnp.int32, o_ref.shape, 1)
    o_ref[...] = (jnp.where(lane == 0, ce_sum, 0.0)
                  + jnp.where(lane == 1, valid_cnt, 0.0)
                  + jnp.where(lane == 2, loc_sum, 0.0)
                  + jnp.where(lane == 3, pos_cnt, 0.0))


@jax.jit
def _run_loss_kernel(cls, tcls, loc, tloc):
    # TODO(synk): for anchor counts in the many-thousands, tile the row axis
    # with an 'arbitrary' grid + scratch accumulator instead of one block.
    cls = jnp.asarray(cls, jnp.float32)
    tcls = jnp.asarray(tcls, jnp.int32)
    loc = jnp.asarray(loc, jnp.float32)
    tloc = jnp.asarray(tloc, jnp.float32)
    N, C = cls.shape
    Np = max(8, _ceil(N, 8))
    Cp = max(128, _ceil(C, 128))
    # Large-negative fill keeps softmax/logsumexp exact on padded class lanes;
    # padded rows carry label -1 so they are ignored.  (Pads fuse under jit.)
    cls_p = jnp.full((Np, Cp), -1e30, jnp.float32).at[:N, :C].set(cls)
    tcls_p = jnp.full((Np, 1), -1, jnp.int32).at[:N, 0].set(tcls)
    loc_p = jnp.zeros((Np, 128), jnp.float32).at[:N, :4].set(loc)
    tloc_p = jnp.zeros((Np, 128), jnp.float32).at[:N, :4].set(tloc)
    out = pl.pallas_call(
        _ce_smoothl1_kernel,
        out_shape=jax.ShapeDtypeStruct((1, 128), jnp.float32),
        grid=(1,),
        in_specs=[
            pl.BlockSpec((Np, Cp), lambda i: (0, 0)),
            pl.BlockSpec((Np, 1), lambda i: (0, 0)),
            pl.BlockSpec((Np, 128), lambda i: (0, 0)),
            pl.BlockSpec((Np, 128), lambda i: (0, 0)),
        ],
        out_specs=pl.BlockSpec((1, 128), lambda i: (0, 0)),
        compiler_params=pltpu.CompilerParams(vmem_limit_bytes=_VMEM_LIMIT),
    )(cls_p, tcls_p, loc_p, tloc_p)
    return out[0, 0], out[0, 1], out[0, 2], out[0, 3]


# ------------------------------------------------------------------
# Conv via im2col rows + Pallas matmul (NHWC, no NCHW round trips);
# the K-pad + bf16 cast are folded into the single fused im2col materialization.
# ------------------------------------------------------------------
def conv_rows(x_nhwc, lin, stride, pad, relu, out_dtype):
    B, H, W, C = x_nhwc.shape
    KH, KW = lin['kh'], lin['kw']
    Ho = (H + 2 * pad - KH) // stride + 1
    Wo = (W + 2 * pad - KW) // stride + 1
    xp = jnp.pad(x_nhwc, ((0, 0), (pad, pad), (pad, pad), (0, 0)))
    taps = []
    for kh in range(KH):
        for kw in range(KW):
            taps.append(lax.slice(
                xp, (0, kh, kw, 0),
                (B, kh + (Ho - 1) * stride + 1, kw + (Wo - 1) * stride + 1, C),
                (1, stride, stride, 1)))
    p = jnp.stack(taps, axis=3)                 # (B,Ho,Wo,KH*KW,C)
    p = jnp.transpose(p, (0, 1, 2, 4, 3))       # (B,Ho,Wo,C,KH*KW) == weight order
    a = p.reshape(B * Ho * Wo, C * KH * KW).astype(jnp.bfloat16)
    Kp = lin['w'].shape[0]
    a = jnp.pad(a, ((0, 0), (0, Kp - a.shape[1])))
    # TODO(synk): fuse the im2col gather into the matmul DMA path (shifted
    # row-window copies via pl.ANY + make_async_copy) to avoid the 9x patches
    # materialization in HBM for large feature maps.
    y = pallas_linear(a, lin, relu=relu, out_dtype=out_dtype)
    return y, Ho, Wo


# ------------------------------------------------------------------
# Box utilities (host glue, mirrors the reference numpy code)
# ------------------------------------------------------------------
def format_loc(anchors, gt):
    anchors = np.asarray(anchors, np.float32)
    gt = np.asarray(gt, np.float32)
    eps = 1e-6
    aw = np.maximum(anchors[:, 2] - anchors[:, 0], eps)
    ah = np.maximum(anchors[:, 3] - anchors[:, 1], eps)
    ax = anchors[:, 0] + 0.5 * aw
    ay = anchors[:, 1] + 0.5 * ah
    gw = np.maximum(gt[:, 2] - gt[:, 0], eps)
    gh = np.maximum(gt[:, 3] - gt[:, 1], eps)
    gx = gt[:, 0] + 0.5 * gw
    gy = gt[:, 1] + 0.5 * gh
    dx = (gx - ax) / aw
    dy = (gy - ay) / ah
    dw = np.log(gw / aw)
    dh = np.log(gh / ah)
    return np.stack([dx, dy, dw, dh], axis=1).astype(np.float32)


def generate_anchors(Hf, Wf, stride, scales=(2, 4, 8), ratios=(0.5, 1.0, 2.0)):
    anchors = []
    for i in range(Hf):
        for j in range(Wf):
            cy = (i + 0.5) * stride
            cx = (j + 0.5) * stride
            for s in scales:
                for r in ratios:
                    ha = stride * s * np.sqrt(r)
                    wa = stride * s / np.sqrt(r)
                    anchors.append([cx - wa / 2, cy - ha / 2, cx + wa / 2, cy + ha / 2])
    return np.asarray(anchors, np.float32)


# ------------------------------------------------------------------
# Jitted device pipelines (params bound via partial -> metadata stays static)
# ------------------------------------------------------------------
def _rpn_device(params, img, anchors):
    B = img.shape[0]
    H_img, W_img = img.shape[2], img.shape[3]
    A = params['n_anchor']
    x = jnp.transpose(img, (0, 2, 3, 1))                                 # NHWC
    bb = params['backbone']
    rows_bb, Hf, Wf = conv_rows(x, bb, FEAT_STRIDE, 1, relu=True,
                                out_dtype=jnp.bfloat16)
    feat = rows_bb[:, :bb['cout']].reshape(B, Hf, Wf, bb['cout'])        # NHWC bf16
    rows_rpn, _, _ = conv_rows(feat, params['rpn_conv'], 1, 1, relu=True,
                               out_dtype=jnp.bfloat16)                   # (M,128) padded
    # Fused 1x1 cls+loc convs: padded input lanes are exact zeros, so the padded
    # rpn_conv rows feed the padded-K weights directly (no slice / repack).
    fused = pallas_linear(rows_rpn, params['rpn_out'], out_dtype=jnp.float32)
    pred_cls = fused[:, :2 * A].reshape(B, Hf * Wf * A, 2)
    pred_loc = fused[:, 2 * A:6 * A].reshape(B, Hf * Wf * A, 4)

    # Proposal generation kept on device (softmax / decode / clip / top-k).
    scores = jax.nn.softmax(pred_cls[0], axis=-1)[:, 1]
    loc = pred_loc[0]
    aw = anchors[:, 2] - anchors[:, 0]
    ah = anchors[:, 3] - anchors[:, 1]
    ax = anchors[:, 0] + 0.5 * aw
    ay = anchors[:, 1] + 0.5 * ah
    cx = ax + loc[:, 0] * aw
    cy = ay + loc[:, 1] * ah
    pw = aw * jnp.exp(jnp.clip(loc[:, 2], -10.0, 10.0))
    ph = ah * jnp.exp(jnp.clip(loc[:, 3], -10.0, 10.0))
    x1 = jnp.clip(cx - pw / 2, 0.0, float(W_img))
    y1 = jnp.clip(cy - ph / 2, 0.0, float(H_img))
    x2 = jnp.clip(cx + pw / 2, 0.0, float(W_img))
    y2 = jnp.clip(cy + ph / 2, 0.0, float(H_img))
    x2 = jnp.maximum(x2, x1 + 1e-2)
    y2 = jnp.maximum(y2, y1 + 1e-2)
    props = jnp.stack([x1, y1, x2, y2], axis=1)
    # TODO(synk): NMS omitted -- deterministic top-k by objectness score instead.
    k = min(30, scores.shape[0])
    _, top_idx = lax.top_k(scores, k)
    rois = props[top_idx]
    return pred_loc, pred_cls, rois, feat


def _head_device(params, feat_nhwc, rois, pool=2):
    # TODO(synk): ROI max-pool is a data-dependent gather; kept as fused JAX
    # (a PrefetchScalarGridSpec Pallas ROI-pool is the next step for big maps).
    f = feat_nhwc[0].astype(jnp.float32)                 # (Hf, Wf, C)
    Hf, Wf, C = f.shape
    rois_f = rois / FEAT_STRIDE
    ys = jnp.arange(Hf, dtype=jnp.float32) + 0.5
    xs = jnp.arange(Wf, dtype=jnp.float32) + 0.5

    def pool_one(roi):
        x1, y1, x2, y2 = roi[0], roi[1], roi[2], roi[3]
        outs = []
        for py in range(pool):
            for px in range(pool):
                by0 = y1 + (y2 - y1) * py / pool
                by1 = y1 + (y2 - y1) * (py + 1) / pool
                bx0 = x1 + (x2 - x1) * px / pool
                bx1 = x1 + (x2 - x1) * (px + 1) / pool
                mask = ((ys[:, None] >= by0) & (ys[:, None] <= by1)
                        & (xs[None, :] >= bx0) & (xs[None, :] <= bx1))
                vals = jnp.where(mask[:, :, None], f, -1e30)
                mx = vals.max(axis=(0, 1))
                mx = jnp.where(mask.any(), mx, 0.0)
                outs.append(mx)
        return jnp.stack(outs, axis=1).reshape(-1)       # (C*pool*pool,)

    pooled = jax.vmap(pool_one)(rois_f)                  # (R, C*4)
    Kp = params['fc1']['w'].shape[0]
    a = jnp.pad(pooled.astype(jnp.bfloat16), ((0, 0), (0, Kp - pooled.shape[1])))
    out = pallas_mlp2(a, params['fc1'], params['head_out'])
    final_loc = out[:, :N_CLASSES * 4]
    final_cls = out[:, N_CLASSES * 4:N_CLASSES * 4 + N_CLASSES]
    return final_loc, final_cls


@jax.jit
def _anchor_assign_device(valid_anchors, bboxes):
    ious = pairwise_iou(valid_anchors, bboxes)           # Pallas IoU kernel
    iou_by_anchor = jnp.max(ious, axis=1)
    argmax_iou = jnp.argmax(ious, axis=1)
    iou_by_gt = jnp.max(ious, axis=0)
    gt_best = jnp.any(ious == iou_by_gt[None, :], axis=1)
    return iou_by_anchor, argmax_iou, gt_best


@jax.jit
def _roi_assign_device(rois, bboxes):
    ious = pairwise_iou(rois, bboxes)                    # Pallas IoU kernel
    return jnp.argmax(ious, axis=1), jnp.max(ious, axis=1)


# ------------------------------------------------------------------
# assign_cls_loc: IoU + reductions on device; only small vectors hit host
# ------------------------------------------------------------------
def assign_cls_loc(bboxes, anchors, image_size, pos_thres=0.7, neg_thres=0.3,
                   n_sample=256, pos_ratio=0.5):
    bboxes_np = np.asarray(bboxes, np.float32)
    valid_idx = np.where((anchors[:, 0] >= 0) & (anchors[:, 1] >= 0)
                         & (anchors[:, 2] <= image_size[0])
                         & (anchors[:, 3] <= image_size[1]))[0]
    valid_cls = np.full((valid_idx.shape[0],), -1, dtype=np.int32)
    valid_anchors = anchors[valid_idx]
    iou_by_anchor, argmax_iou, gt_best = jax.device_get(
        _anchor_assign_device(jnp.asarray(valid_anchors), jnp.asarray(bboxes_np)))
    pos_idx = np.where(iou_by_anchor >= pos_thres)[0]
    neg_idx = np.where(iou_by_anchor < neg_thres)[0]
    valid_cls[pos_idx] = 1
    valid_cls[neg_idx] = 0
    valid_cls[np.where(gt_best)[0]] = 1
    total_n_pos = len(np.where(valid_cls == 1)[0])
    n_pos = int(n_sample * pos_ratio) if total_n_pos > n_sample * pos_ratio else total_n_pos
    n_neg = n_sample - n_pos
    pos_index = np.where(valid_cls == 1)[0]
    # TODO(synk): np.random.choice sampling kept host-side (seeded) -- no Pallas equivalent.
    if len(pos_index) > n_sample * pos_ratio:
        disable = np.random.choice(pos_index, size=len(pos_index) - n_pos, replace=False)
        valid_cls[disable] = -1
    neg_index = np.where(valid_cls == 0)[0]
    n_disable = max(len(neg_index) - n_neg, 0)
    if n_disable > 0:
        disable = np.random.choice(neg_index, size=n_disable, replace=False)
        valid_cls[disable] = -1
    max_iou_box = bboxes_np[np.asarray(argmax_iou)]
    valid_loc = format_loc(valid_anchors, max_iou_box)
    target_cls = np.full((len(anchors),), -1, dtype=np.int32)
    target_cls[valid_idx] = valid_cls
    target_loc = np.zeros((len(anchors), 4), dtype=np.float32)
    target_loc[valid_idx] = valid_loc
    return target_cls, target_loc


def proposal_target_creator(rois, bboxes, labels, n_sample=32, pos_iou_thresh=0.5):
    bboxes_np = np.asarray(bboxes, np.float32)
    rois = np.concatenate([np.asarray(rois, np.float32), bboxes_np], axis=0)
    gt_assign, max_iou = jax.device_get(
        _roi_assign_device(jnp.asarray(rois), jnp.asarray(bboxes_np)))
    labels_np = np.asarray(labels)
    gt_roi_label = labels_np[gt_assign].astype(np.int32) + 1
    gt_roi_label[max_iou < pos_iou_thresh] = 0
    # TODO(synk): random fg/bg ROI sampling replaced by deterministic keep.
    keep = np.arange(min(n_sample, rois.shape[0]))
    sample_roi = rois[keep]
    gt_roi_label = gt_roi_label[keep]
    gt_roi_loc = format_loc(sample_roi, bboxes_np[gt_assign[keep]])
    return sample_roi, gt_roi_loc, gt_roi_label


# ------------------------------------------------------------------
# Losses (reductions run in the Pallas loss kernel)
# ------------------------------------------------------------------
def rpn_loss(pred_loc, pred_cls, target_loc, target_cls, rpn_lamda=10.0):
    ce_sum, valid_cnt, loc_sum, pos_cnt = _run_loss_kernel(
        pred_cls[0], jnp.asarray(target_cls, jnp.int32),
        pred_loc[0], jnp.asarray(target_loc, jnp.float32))
    rpn_cls_loss = ce_sum / jnp.maximum(valid_cnt, 1.0)   # CE w/ ignore_index=-1 (mean)
    rpn_loc_loss = loc_sum                                 # unnormalized sum (as reference)
    total = rpn_cls_loss + rpn_lamda / jnp.maximum(pos_cnt, 1.0) * rpn_loc_loss
    # NOTE: order (cls, loc, total) matches the reference's return signature.
    return rpn_cls_loss, rpn_loc_loss, total


@jax.jit
def _fastrcnn_loss_device(roi_loc, roi_cls, gt_loc, gt_cls):
    R = roi_cls.shape[0]
    roi_loc3 = roi_loc.reshape(R, N_CLASSES, 4)
    sel_loc = jnp.take_along_axis(roi_loc3, gt_cls[:, None, None], axis=1)[:, 0, :]
    return _run_loss_kernel(roi_cls, gt_cls, sel_loc, gt_loc)


def fastrcnn_loss(roi_loc, roi_cls, gt_loc, gt_cls):
    gt_cls_j = jnp.asarray(gt_cls, jnp.int32)
    gt_loc_j = jnp.asarray(gt_loc, jnp.float32)
    ce_sum, cnt, loc_sum, pos_cnt = _fastrcnn_loss_device(
        jnp.asarray(roi_loc, jnp.float32), jnp.asarray(roi_cls, jnp.float32),
        gt_loc_j, gt_cls_j)
    cls_loss = ce_sum / jnp.maximum(cnt, 1.0)
    loc_loss = loc_sum
    roi_loss = cls_loss + 10.0 / jnp.maximum(pos_cnt, 1.0) * loc_loss
    return cls_loss, loc_loss, roi_loss


# ------------------------------------------------------------------
# FasterRCNN.forward
# ------------------------------------------------------------------
def faster_rcnn_forward(params, img, bboxes, labels):
    b, c, h, w = img.shape
    bb = params['backbone']
    Hf = (h + 2 - bb['kh']) // FEAT_STRIDE + 1
    Wf = (w + 2 - bb['kw']) // FEAT_STRIDE + 1
    anchors = generate_anchors(Hf, Wf, FEAT_STRIDE)

    # Device pipelines: params bound via partial so metadata ints stay static;
    # jit fuses all pad/slice/transpose glue around the pallas_calls.
    rpn_fn = jax.jit(functools.partial(_rpn_device, params))
    head_fn = jax.jit(functools.partial(_head_device, params))

    pred_loc, pred_cls, rois_dev, feat_nhwc = rpn_fn(img, jnp.asarray(anchors))

    target_cls, target_loc = assign_cls_loc(bboxes, anchors, (w, h))
    # (same unpacking order as the reference module)
    rpn_loc_loss, rpn_cls_loss, t_rpn_loss = rpn_loss(pred_loc, pred_cls,
                                                      target_loc, target_cls)

    rois = np.asarray(jax.device_get(rois_dev), np.float32)
    sample_roi, gt_roi_loc, gt_roi_label = proposal_target_creator(rois, bboxes, labels)
    final_loc, final_cls = head_fn(feat_nhwc, jnp.asarray(sample_roi, jnp.float32))
    roi_cls_loss, roi_loc_loss, t_roi_loss = fastrcnn_loss(final_loc, final_cls,
                                                           gt_roi_loc, gt_roi_label)
    t_loss = jnp.sum(t_roi_loss + t_rpn_loss)
    return rpn_loc_loss, rpn_cls_loss, roi_cls_loss, roi_loc_loss, t_loss


# ------------------------------------------------------------------
# Deterministic synthetic parameters
# ------------------------------------------------------------------
def init_params(key):
    ks = jax.random.split(key, 7)
    C_bb, C_mid, A = 16, 16, 9
    p = {
        'bb_w': jax.random.normal(ks[0], (C_bb, 3, 3, 3), jnp.float32) * 0.05,
        'bb_b': jnp.zeros((C_bb,), jnp.float32),
        'rpn_conv_w': jax.random.normal(ks[1], (C_mid, C_bb, 3, 3), jnp.float32) * 0.05,
        'rpn_conv_b': jnp.zeros((C_mid,), jnp.float32),
        'rpn_cls_w': jax.random.normal(ks[2], (2 * A, C_mid, 1, 1), jnp.float32) * 0.05,
        'rpn_cls_b': jnp.zeros((2 * A,), jnp.float32),
        'rpn_loc_w': jax.random.normal(ks[3], (4 * A, C_mid, 1, 1), jnp.float32) * 0.05,
        'rpn_loc_b': jnp.zeros((4 * A,), jnp.float32),
        'fc1_w': jax.random.normal(ks[4], (C_bb * 4, 32), jnp.float32) * 0.05,
        'fc1_b': jnp.zeros((32,), jnp.float32),
        'cls_w': jax.random.normal(ks[5], (32, N_CLASSES), jnp.float32) * 0.05,
        'cls_b': jnp.zeros((N_CLASSES,), jnp.float32),
        'loc_w': jax.random.normal(ks[6], (32, N_CLASSES * 4), jnp.float32) * 0.05,
        'loc_b': jnp.zeros((N_CLASSES * 4,), jnp.float32),
    }
    return p


if __name__ == "__main__":
    np.random.seed(0)
    key = jax.random.PRNGKey(0)
    k_img, k_params = jax.random.split(key)
    img = jax.random.normal(k_img, (1, 3, 16, 16), jnp.float32)       # NCHW
    bboxes = jnp.array([[2.0, 2.0, 9.0, 9.0],
                        [6.0, 5.0, 14.0, 13.0]], jnp.float32)          # (G,4) x1,y1,x2,y2
    labels = jnp.array([3, 7], jnp.int32)                              # object class ids
    raw_params = init_params(k_params)
    params = prepare_params(raw_params)    # pad / fuse / bf16-cast weights ONCE

    outs = faster_rcnn_forward(params, img, bboxes, labels)
    outs = jax.block_until_ready(outs)
    assert all(bool(jnp.isfinite(o)) for o in outs)
    print("KERNEL_OK")
</pallas_src>

<mosaic_0001>
module attributes {stable_mosaic.version = 11 : i64} {
  func.func @_linear_kernel(%arg0: i32, %arg1: memref<64x128xbf16, #tpu.memory_space<vmem>>, %arg2: memref<128x128xbf16, #tpu.memory_space<vmem>>, %arg3: memref<1x128xf32, #tpu.memory_space<vmem>>, %arg4: memref<64x128xbf16, #tpu.memory_space<vmem>>) attributes {dimension_semantics = [#tpu.dimension_semantics<parallel>], iteration_bounds = array<i64: 1>, scalar_prefetch = 0 : i64, scratch_operands = 0 : i64, tpu.core_type = #tpu.core_type<tc>, window_params = [{transform_indices = @transform_0, window_bounds = array<i64: 64, 128>}, {pipeline_mode = #tpu.pipeline_mode<synchronous>, transform_indices = @transform_1, window_bounds = array<i64: 128, 128>}, {pipeline_mode = #tpu.pipeline_mode<synchronous>, transform_indices = @transform_2, window_bounds = array<i64: 1, 128>}, {transform_indices = @transform_3, window_bounds = array<i64: 64, 128>}]} {
    %c0 = arith.constant 0 : index
    %c0_0 = arith.constant 0 : index
    %0 = vector.load %arg1[%c0, %c0_0] : memref<64x128xbf16, #tpu.memory_space<vmem>>, vector<64x128xbf16>
    %c0_1 = arith.constant 0 : index
    %c0_2 = arith.constant 0 : index
    %1 = vector.load %arg2[%c0_1, %c0_2] : memref<128x128xbf16, #tpu.memory_space<vmem>>, vector<128x128xbf16>
    %cst = arith.constant dense<0.000000e+00> : vector<64x128xf32>
    %2 = tpu.matmul %0, %1, %cst {dimension_numbers = #tpu.dot_dimension_numbers<[1], [0], [0], [1], [0, 0, 1, 1], [], []>} : vector<64x128xbf16>, vector<128x128xbf16>, vector<64x128xf32> -> vector<64x128xf32>
    %c0_3 = arith.constant 0 : index
    %c0_4 = arith.constant 0 : index
    %3 = vector.load %arg3[%c0_3, %c0_4] : memref<1x128xf32, #tpu.memory_space<vmem>>, vector<1x128xf32>
    %4 = vector.broadcast %3 : vector<1x128xf32> to vector<64x128xf32>
    %5 = arith.addf %2, %4 : vector<64x128xf32>
    %cst_5 = arith.constant 0.000000e+00 : f32
    %6 = vector.broadcast %cst_5 : f32 to vector<64x128xf32>
    %7 = arith.maximumf %5, %6 : vector<64x128xf32>
    %8 = arith.truncf %7 : vector<64x128xf32> to vector<64x128xbf16>
    %c0_6 = arith.constant 0 : index
    %c0_7 = arith.constant 0 : index
    %9 = vector.load %arg4[%c0_6, %c0_7] : memref<64x128xbf16, #tpu.memory_space<vmem>>, vector<64x128xbf16>
    tpu.vector_store %arg4[%c0_6, %c0_7], %8 {strides = array<i32>} : memref<64x128xbf16, #tpu.memory_space<vmem>>, vector<64x128xbf16>,
    return
  }
  func.func @transform_0(%arg0: i32) -> (i32, i32) {
    %c0_i32 = arith.constant 0 : i32
    %c0_i32_0 = arith.constant 0 : i32
    return %arg0, %c0_i32 : i32, i32
  }
  func.func @transform_1(%arg0: i32) -> (i32, i32) {
    %c0_i32 = arith.constant 0 : i32
    %c0_i32_0 = arith.constant 0 : i32
    %c0_i32_1 = arith.constant 0 : i32
    return %c0_i32, %c0_i32_0 : i32, i32
  }
  func.func @transform_2(%arg0: i32) -> (i32, i32) {
    %c0_i32 = arith.constant 0 : i32
    %c0_i32_0 = arith.constant 0 : i32
    %c0_i32_1 = arith.constant 0 : i32
    return %c0_i32, %c0_i32_0 : i32, i32
  }
  func.func @transform_3(%arg0: i32) -> (i32, i32) {
    %c0_i32 = arith.constant 0 : i32
    %c0_i32_0 = arith.constant 0 : i32
    return %arg0, %c0_i32 : i32, i32
  }
}

module attributes {stable_mosaic.version = 11 : i64} {
  func.func @_linear_kernel(%arg0: i32, %arg1: memref<64x256xbf16, #tpu.memory_space<vmem>>, %arg2: memref<256x128xbf16, #tpu.memory_space<vmem>>, %arg3: memref<1x128xf32, #tpu.memory_space<vmem>>, %arg4: memref<64x128xbf16, #tpu.memory_space<vmem>>) attributes {dimension_semantics = [#tpu.dimension_semantics<parallel>], iteration_bounds = array<i64: 1>, scalar_prefetch = 0 : i64, scratch_operands = 0 : i64, tpu.core_type = #tpu.core_type<tc>, window_params = [{transform_indices = @transform_0, window_bounds = array<i64: 64, 256>}, {pipeline_mode = #tpu.pipeline_mode<synchronous>, transform_indices = @transform_1, window_bounds = array<i64: 256, 128>}, {pipeline_mode = #tpu.pipeline_mode<synchronous>, transform_indices = @transform_2, window_bounds = array<i64: 1, 128>}, {transform_indices = @transform_3, window_bounds = array<i64: 64, 128>}]} {
    %c0 = arith.constant 0 : index
    %c0_0 = arith.constant 0 : index
    %0 = vector.load %arg1[%c0, %c0_0] : memref<64x256xbf16, #tpu.memory_space<vmem>>, vector<64x256xbf16>
    %c0_1 = arith.constant 0 : index
    %c0_2 = arith.constant 0 : index
    %1 = vector.load %arg2[%c0_1, %c0_2] : memref<256x128xbf16, #tpu.memory_space<vmem>>, vector<256x128xbf16>
    %cst = arith.constant dense<0.000000e+00> : vector<64x128xf32>
    %2 = tpu.matmul %0, %1, %cst {dimension_numbers = #tpu.dot_dimension_numbers<[1], [0], [0], [1], [0, 0, 1, 1], [], []>} : vector<64x256xbf16>, vector<256x128xbf16>, vector<64x128xf32> -> vector<64x128xf32>
    %c0_3 = arith.constant 0 : index
    %c0_4 = arith.constant 0 : index
    %3 = vector.load %arg3[%c0_3, %c0_4] : memref<1x128xf32, #tpu.memory_space<vmem>>, vector<1x128xf32>
    %4 = vector.broadcast %3 : vector<1x128xf32> to vector<64x128xf32>
    %5 = arith.addf %2, %4 : vector<64x128xf32>
    %cst_5 = arith.constant 0.000000e+00 : f32
    %6 = vector.broadcast %cst_5 : f32 to vector<64x128xf32>
    %7 = arith.maximumf %5, %6 : vector<64x128xf32>
    %8 = arith.truncf %7 : vector<64x128xf32> to vector<64x128xbf16>
    %c0_6 = arith.constant 0 : index
    %c0_7 = arith.constant 0 : index
    %9 = vector.load %arg4[%c0_6, %c0_7] : memref<64x128xbf16, #tpu.memory_space<vmem>>, vector<64x128xbf16>
    tpu.vector_store %arg4[%c0_6, %c0_7], %8 {strides = array<i32>} : memref<64x128xbf16, #tpu.memory_space<vmem>>, vector<64x128xbf16>,
    return
  }
  func.func @transform_0(%arg0: i32) -> (i32, i32) {
    %c0_i32 = arith.constant 0 : i32
    %c0_i32_0 = arith.constant 0 : i32
    return %arg0, %c0_i32 : i32, i32
  }
  func.func @transform_1(%arg0: i32) -> (i32, i32) {
    %c0_i32 = arith.constant 0 : i32
    %c0_i32_0 = arith.constant 0 : i32
    %c0_i32_1 = arith.constant 0 : i32
    return %c0_i32, %c0_i32_0 : i32, i32
  }
  func.func @transform_2(%arg0: i32) -> (i32, i32) {
    %c0_i32 = arith.constant 0 : i32
    %c0_i32_0 = arith.constant 0 : i32
    %c0_i32_1 = arith.constant 0 : i32
    return %c0_i32, %c0_i32_0 : i32, i32
  }
  func.func @transform_3(%arg0: i32) -> (i32, i32) {
    %c0_i32 = arith.constant 0 : i32
    %c0_i32_0 = arith.constant 0 : i32
    return %arg0, %c0_i32 : i32, i32
  }
}

module attributes {stable_mosaic.version = 11 : i64} {
  func.func @_linear_kernel(%arg0: i32, %arg1: memref<64x128xbf16, #tpu.memory_space<vmem>>, %arg2: memref<128x128xbf16, #tpu.memory_space<vmem>>, %arg3: memref<1x128xf32, #tpu.memory_space<vmem>>, %arg4: memref<64x128xf32, #tpu.memory_space<vmem>>) attributes {dimension_semantics = [#tpu.dimension_semantics<parallel>], iteration_bounds = array<i64: 1>, scalar_prefetch = 0 : i64, scratch_operands = 0 : i64, tpu.core_type = #tpu.core_type<tc>, window_params = [{transform_indices = @transform_0, window_bounds = array<i64: 64, 128>}, {pipeline_mode = #tpu.pipeline_mode<synchronous>, transform_indices = @transform_1, window_bounds = array<i64: 128, 128>}, {pipeline_mode = #tpu.pipeline_mode<synchronous>, transform_indices = @transform_2, window_bounds = array<i64: 1, 128>}, {transform_indices = @transform_3, window_bounds = array<i64: 64, 128>}]} {
    %c0 = arith.constant 0 : index
    %c0_0 = arith.constant 0 : index
    %0 = vector.load %arg1[%c0, %c0_0] : memref<64x128xbf16, #tpu.memory_space<vmem>>, vector<64x128xbf16>
    %c0_1 = arith.constant 0 : index
    %c0_2 = arith.constant 0 : index
    %1 = vector.load %arg2[%c0_1, %c0_2] : memref<128x128xbf16, #tpu.memory_space<vmem>>, vector<128x128xbf16>
    %cst = arith.constant dense<0.000000e+00> : vector<64x128xf32>
    %2 = tpu.matmul %0, %1, %cst {dimension_numbers = #tpu.dot_dimension_numbers<[1], [0], [0], [1], [0, 0, 1, 1], [], []>} : vector<64x128xbf16>, vector<128x128xbf16>, vector<64x128xf32> -> vector<64x128xf32>
    %c0_3 = arith.constant 0 : index
    %c0_4 = arith.constant 0 : index
    %3 = vector.load %arg3[%c0_3, %c0_4] : memref<1x128xf32, #tpu.memory_space<vmem>>, vector<1x128xf32>
    %4 = vector.broadcast %3 : vector<1x128xf32> to vector<64x128xf32>
    %5 = arith.addf %2, %4 : vector<64x128xf32>
    %c0_5 = arith.constant 0 : index
    %c0_6 = arith.constant 0 : index
    %6 = vector.load %arg4[%c0_5, %c0_6] : memref<64x128xf32, #tpu.memory_space<vmem>>, vector<64x128xf32>
    tpu.vector_store %arg4[%c0_5, %c0_6], %5 {strides = array<i32>} : memref<64x128xf32, #tpu.memory_space<vmem>>, vector<64x128xf32>,
    return
  }
  func.func @transform_0(%arg0: i32) -> (i32, i32) {
    %c0_i32 = arith.constant 0 : i32
    %c0_i32_0 = arith.constant 0 : i32
    return %arg0, %c0_i32 : i32, i32
  }
  func.func @transform_1(%arg0: i32) -> (i32, i32) {
    %c0_i32 = arith.constant 0 : i32
    %c0_i32_0 = arith.constant 0 : i32
    %c0_i32_1 = arith.constant 0 : i32
    return %c0_i32, %c0_i32_0 : i32, i32
  }
  func.func @transform_2(%arg0: i32) -> (i32, i32) {
    %c0_i32 = arith.constant 0 : i32
    %c0_i32_0 = arith.constant 0 : i32
    %c0_i32_1 = arith.constant 0 : i32
    return %c0_i32, %c0_i32_0 : i32, i32
  }
  func.func @transform_3(%arg0: i32) -> (i32, i32) {
    %c0_i32 = arith.constant 0 : i32
    %c0_i32_0 = arith.constant 0 : i32
    return %arg0, %c0_i32 : i32, i32
  }
}

</mosaic_0001>

<bundles_post_ra>
// kernel: _rpn_device.3
= control target key start
LH: loop header
LB: loop body
LE: loop exit
PB: predicated region body
PF: predicated region fallthrough
CT: control target
= control target key end

     0   :  { %s422_s1 = inlined_call_operand.vmem [shape: bf16[128,128], index: 1, kind: input, shape index: {}]   ;;  %s423_s0 = inlined_call_operand.vmem [shape: bf16[64,128], index: 0, kind: input, shape index: {}]   ;;  %s424_s2 = inlined_call_operand.vmem [shape: f32[1,128], index: 2, kind: input, shape index: {}]   ;;  %s425_s3 = inlined_call_operand.vmem [shape: bf16[64,128], index: 3, kind: output, shape index: {}]  }
   0x1   :  { %v339_v0 = vld [vmem:[%s422_s1] sm:$0xff]   ;;  %v340_v1 = vld [vmem:[%s422_s1 + $0x8] sm:$0xff]   ;;  %v341_v2 = vld [vmem:[%s422_s1 + $0x10] sm:$0xff]  }
   0x2   :  { %299 = vmatprep.subr.bf16.mxu0 %v339_v0  ;;  %323 = vmatprep.subr.bf16.mxu1 %v339_v0  ;;  %v342_v3 = vld [vmem:[%s422_s1 + $0x18] sm:$0xff]   ;;  %v347_v4 = vld [vmem:[%s423_s0] sm:$0xff]   ;;  %v348_v5 = vld [vmem:[%s423_s0 + $0x10] sm:$0xff]  }
   0x3   :  { %300 = vmatpush3.bf16.msra.mxu0 %v339_v0  ;;  %331 = vmatpush3.bf16.msra.mxu1 %v339_v0  ;;  %v343_v6 = vld [vmem:[%s422_s1 + $0x20] sm:$0xff]   ;;  %v344_v7 = vld [vmem:[%s422_s1 + $0x28] sm:$0xff]   ;;  %v345_v8 = vld [vmem:[%s422_s1 + $0x30] sm:$0xff]  }
   0x4   :  { %301 = vmatprep.subr.bf16.mxu0 %v340_v1  ;;  %324 = vmatprep.subr.bf16.mxu1 %v340_v1  ;;  %v346_v9 = vld [vmem:[%s422_s1 + $0x38] sm:$0xff]   ;;  %v349_v10 = vld [vmem:[%s423_s0 + $0x8] sm:$0xff]   ;;  %v235_v12 = vld [vmem:[%s424_s2] ss:$0 sm:$0xff] }
   0x5   :  { %315 = vmatprep.mubr.bf16.mxu0 %v347_v4  ;;  %319 = vmatprep.mubr.bf16.mxu1 %v348_v5  ;;  %v350_v11 = vld [vmem:[%s423_s0 + $0x18] sm:$0xff]  }
   0x7   :  { %302 = vmatpush3.bf16.msra.mxu0 %v340_v1  ;;  %332 = vmatpush3.bf16.msra.mxu1 %v340_v1 }
   0x8   :  { %303 = vmatprep.subr.bf16.mxu0 %v341_v2  ;;  %325 = vmatprep.subr.bf16.mxu1 %v341_v2 }
   0xb   :  { %304 = vmatpush3.bf16.msra.mxu0 %v341_v2  ;;  %333 = vmatpush3.bf16.msra.mxu1 %v341_v2 }
   0xc   :  { %305 = vmatprep.subr.bf16.mxu0 %v342_v3  ;;  %326 = vmatprep.subr.bf16.mxu1 %v342_v3 }
   0xf   :  { %306 = vmatpush3.bf16.msra.mxu0 %v342_v3  ;;  %334 = vmatpush3.bf16.msra.mxu1 %v342_v3 }
  0x10   :  { %307 = vmatprep.subr.bf16.mxu0 %v343_v6  ;;  %327 = vmatprep.subr.bf16.mxu1 %v343_v6 }
  0x13   :  { %308 = vmatpush3.bf16.msra.mxu0 %v343_v6  ;;  %335 = vmatpush3.bf16.msra.mxu1 %v343_v6 }
  0x14   :  { %309 = vmatprep.subr.bf16.mxu0 %v344_v7  ;;  %328 = vmatprep.subr.bf16.mxu1 %v344_v7 }
  0x17   :  { %310 = vmatpush3.bf16.msra.mxu0 %v344_v7  ;;  %336 = vmatpush3.bf16.msra.mxu1 %v344_v7 }
  0x18   :  { %311 = vmatprep.subr.bf16.mxu0 %v345_v8  ;;  %329 = vmatprep.subr.bf16.mxu1 %v345_v8 }
  0x1b   :  { %312 = vmatpush3.bf16.msra.mxu0 %v345_v8  ;;  %337 = vmatpush3.bf16.msra.mxu1 %v345_v8 }
  0x1c   :  { %313 = vmatprep.subr.bf16.mxu0 %v346_v9  ;;  %330 = vmatprep.subr.bf16.mxu1 %v346_v9 }
  0x1f   :  { %314 = vmatpush3.bf16.msra.mxu0 %v346_v9  ;;  %338 = vmatpush3.bf16.msra.mxu1 %v346_v9 }
  0x22   :  { %316 = vmatmul.mubr.bf16.vlgmr.msra.gmra.mrb[0].mxu0 %v349_v10  ;;  %320 = vmatmul.mubr.bf16.vlgmr.msra.gmra.mrb[0].mxu1 %v350_v11 }
  0xf5   :  { %v317_v13 = vpop.f32.mrb[0].mxu0  ;;  %v321_v14 = vpop.f32.mrb[0].mxu1 }
  0xf6   :  { %v161_v15 = vadd.f32 %v317_v13, %v235_v12  ;;  %v177_v16 = vadd.f32 %v321_v14, %v235_v12  ;;  %v152_v17 = vpop.f32.mrb[1].mxu0  ;;  %v168_v18 = vpop.f32.mrb[1].mxu1 }
  0xf7   :  { %v153_v19 = vadd.f32 %v235_v12, %v152_v17  ;;  %v169_v20 = vadd.f32 %v235_v12, %v168_v18  ;;  %v318_v21 = vpop.f32.mrb[2].mxu0  ;;  %v322_v22 = vpop.f32.mrb[2].mxu1 }
  0xf8   :  { %v164_v23 = vadd.f32 %v318_v21, %v235_v12  ;;  %v180_v24 = vadd.f32 %v322_v22, %v235_v12  ;;  %v155_v25 = vpop.f32.mrb[3].mxu0  ;;  %v171_v26 = vpop.f32.mrb[3].mxu1  ;;  %v185_v29 = vmax.f32 %v161_v15, 0.0  ;;  %v189_v30 = vmax.f32 %v177_v16, 0.0 }
  0xf9   :  { %v156_v27 = vadd.f32 %v235_v12, %v155_v25  ;;  %v172_v28 = vadd.f32 %v235_v12, %v171_v26  ;;  %v183_v33 = vmax.f32 %v153_v19, 0.0  ;;  %v187_v34 = vmax.f32 %v169_v20, 0.0 }
  0xfa   :  { %v186_v31 = vmax.f32 %v164_v23, 0.0  ;;  %v190_v32 = vmax.f32 %v180_v24, 0.0 }
  0xfb   :  { %v184_v35 = vmax.f32 %v156_v27, 0.0  ;;  %v188_v36 = vmax.f32 %v172_v28, 0.0 }
  0xfc   :  { %v272_v37 = vpack.c.bf16 %v186_v31, %v185_v29  ;;  %v282_v38 = vpack.c.bf16 %v190_v32, %v189_v30 }
  0xfd   :  { %v267_v39 = vpack.c.bf16 %v184_v35, %v183_v33  ;;  %v277_v40 = vpack.c.bf16 %v188_v36, %v187_v34 }
  0xfe   :  { %284 = vst [vmem:[%s425_s3 + $0x8] sm:$0xff] %v272_v37   ;;  %286 = vst [vmem:[%s425_s3 + $0x18] sm:$0xff] %v282_v38  }
  0xff   :  { %268 = vst [vmem:[%s425_s3] sm:$0xff] %v267_v39   ;;  %285 = vst [vmem:[%s425_s3 + $0x10] sm:$0xff] %v277_v40  }

// kernel: _rpn_device.4
= control target key start
LH: loop header
LB: loop body
LE: loop exit
PB: predicated region body
PF: predicated region fallthrough
CT: control target
= control target key end

     0   :  { %s570_s1 = inlined_call_operand.vmem [shape: bf16[256,128], index: 1, kind: input, shape index: {}]   ;;  %s571_s0 = inlined_call_operand.vmem [shape: bf16[64,256], index: 0, kind: input, shape index: {}]   ;;  %s572_s2 = inlined_call_operand.vmem [shape: f32[1,128], index: 2, kind: input, shape index: {}]   ;;  %s573_s3 = inlined_call_operand.vmem [shape: bf16[64,128], index: 3, kind: output, shape index: {}]  }
   0x1   :  { %v435_v0 = vld [vmem:[%s570_s1 + $0x40] sm:$0xff]   ;;  %v437_v2 = vld [vmem:[%s570_s1 + $0x48] sm:$0xff]   ;;  %v439_v4 = vld [vmem:[%s570_s1 + $0x50] sm:$0xff]  }
   0x2   :  { %v436_v1 = vld [vmem:[%s570_s1] sm:$0xff]   ;;  %379 = vmatprep.subr.bf16.mxu0 %v435_v0  ;;  %419 = vmatprep.subr.bf16.mxu1 %v435_v0  ;;  %v438_v3 = vld [vmem:[%s570_s1 + $0x8] sm:$0xff]   ;;  %v440_v5 = vld [vmem:[%s570_s1 + $0x10] sm:$0xff]  }
   0x3   :  { %380 = vmatpush3.bf16.msra.mxu0 %v436_v1  ;;  %427 = vmatpush3.bf16.msra.mxu1 %v436_v1  ;;  %v441_v6 = vld [vmem:[%s570_s1 + $0x58] sm:$0xff]   ;;  %v443_v8 = vld [vmem:[%s570_s1 + $0x60] sm:$0xff]   ;;  %v445_v10 = vld [vmem:[%s570_s1 + $0x68] sm:$0xff]  }
   0x4   :  { %381 = vmatprep.subr.bf16.mxu0 %v437_v2  ;;  %420 = vmatprep.subr.bf16.mxu1 %v437_v2  ;;  %v442_v7 = vld [vmem:[%s570_s1 + $0x18] sm:$0xff]   ;;  %v444_v9 = vld [vmem:[%s570_s1 + $0x20] sm:$0xff]   ;;  %v446_v13 = vld [vmem:[%s570_s1 + $0x28] sm:$0xff]  }
   0x5   :  { %v453_v11 = vld [vmem:[%s571_s0 + $0x4] ss:$8 sps:$4 sm:$0xff]   ;;  %v447_v14 = vld [vmem:[%s570_s1 + $0x70] sm:$0xff]   ;;  %v449_v16 = vld [vmem:[%s570_s1 + $0x78] sm:$0xff]  }
   0x6   :  { %v456_v12 = vld [vmem:[%s571_s0 + $0x24] ss:$8 sps:$4 sm:$0xff]   ;;  %230 = vmatprep.mubr.bf16.mxu0 %v453_v11  ;;  %v448_v15 = vld [vmem:[%s570_s1 + $0x30] sm:$0xff]   ;;  %v450_v17 = vld [vmem:[%s570_s1 + $0x38] sm:$0xff]  }
   0x7   :  { %382 = vmatpush3.bf16.msra.mxu0 %v438_v3  ;;  %428 = vmatpush3.bf16.msra.mxu1 %v438_v3  ;;  %v451_v18 = vld [vmem:[%s571_s0] ss:$8 sps:$4 sm:$0xff]   ;;  %v457_v20 = vld [vmem:[%s571_s0 + $0x14] ss:$8 sps:$4 sm:$0xff]   ;;  %v461_v22 = vld [vmem:[%s571_s0 + $0x10] ss:$8 sps:$4 sm:$0xff]  }
   0x8   :  { %383 = vmatprep.subr.bf16.mxu0 %v439_v4  ;;  %421 = vmatprep.subr.bf16.mxu1 %v439_v4  ;;  %v454_v19 = vld [vmem:[%s571_s0 + $0x20] ss:$8 sps:$4 sm:$0xff]   ;;  %v459_v21 = vld [vmem:[%s571_s0 + $0x34] ss:$8 sps:$4 sm:$0xff]   ;;  %v462_v23 = vld [vmem:[%s571_s0 + $0x30] ss:$8 sps:$4 sm:$0xff]  }
   0x9   :  { %246 = vmatprep.mubr.bf16.mxu1 %v456_v12  ;;  %v315_v26 = vld [vmem:[%s572_s2] ss:$0 sm:$0xff] }
   0xb   :  { %384 = vmatpush3.bf16.msra.mxu0 %v440_v5  ;;  %429 = vmatpush3.bf16.msra.mxu1 %v440_v5 }
   0xc   :  { %385 = vmatprep.subr.bf16.mxu0 %v441_v6  ;;  %422 = vmatprep.subr.bf16.mxu1 %v441_v6 }
   0xf   :  { %386 = vmatpush3.bf16.msra.mxu0 %v442_v7  ;;  %430 = vmatpush3.bf16.msra.mxu1 %v442_v7 }
  0x10   :  { %387 = vmatprep.subr.bf16.mxu0 %v443_v8  ;;  %423 = vmatprep.subr.bf16.mxu1 %v443_v8 }
  0x13   :  { %388 = vmatpush3.bf16.msra.mxu0 %v444_v9  ;;  %431 = vmatpush3.bf16.msra.mxu1 %v444_v9 }
  0x14   :  { %389 = vmatprep.subr.bf16.mxu0 %v445_v10  ;;  %424 = vmatprep.subr.bf16.mxu1 %v445_v10 }
  0x17   :  { %390 = vmatpush3.bf16.msra.mxu0 %v446_v13  ;;  %432 = vmatpush3.bf16.msra.mxu1 %v446_v13 }
  0x18   :  { %391 = vmatprep.subr.bf16.mxu0 %v447_v14  ;;  %425 = vmatprep.subr.bf16.mxu1 %v447_v14 }
  0x1b   :  { %392 = vmatpush3.bf16.msra.mxu0 %v448_v15  ;;  %433 = vmatpush3.bf16.msra.mxu1 %v448_v15 }
  0x1c   :  { %393 = vmatprep.subr.bf16.mxu0 %v449_v16  ;;  %426 = vmatprep.subr.bf16.mxu1 %v449_v16 }
  0x1f   :  { %394 = vmatpush3.bf16.msra.mxu0 %v450_v17  ;;  %434 = vmatpush3.bf16.msra.mxu1 %v450_v17 }
  0x22   :  { %231 = vmatmul.mubr.bf16.vlgmr.msra.gmra.mrb[0].mxu0 %v451_v18  ;;  %247 = vmatmul.mubr.bf16.vlgmr.msra.gmra.mrb[0].mxu1 %v454_v19 }
  0x23   :  { %238 = vmatprep.mubr.bf16.mxu0 %v457_v20  ;;  %254 = vmatprep.mubr.bf16.mxu1 %v459_v21 }
  0x2a   :  { %239 = vmatmul.mubr.bf16.gmra.mrb[4].mxu0 %v461_v22  ;;  %255 = vmatmul.mubr.bf16.gmra.mrb[4].mxu1 %v462_v23 }
  0xf5   :  { %v395_v24 = vpop.f32.mrb[0].mxu0  ;;  %v407_v25 = vpop.f32.mrb[0].mxu1 }
  0xf6   :  { %v396_v27 = vpop.f32.mrb[1].mxu0  ;;  %v408_v28 = vpop.f32.mrb[1].mxu1 }
  0xf7   :  { %v397_v29 = vadd.f32 %v396_v27, %v395_v24  ;;  %v409_v30 = vadd.f32 %v408_v28, %v407_v25  ;;  %v398_v31 = vpop.f32.mrb[2].mxu0  ;;  %v410_v32 = vpop.f32.mrb[2].mxu1 }
  0xf8   :  { %v399_v33 = vpop.f32.mrb[3].mxu0  ;;  %v411_v34 = vpop.f32.mrb[3].mxu1 }
  0xf9   :  { %v233_v35 = vadd.f32 %v397_v29, %v315_v26  ;;  %v249_v36 = vadd.f32 %v409_v30, %v315_v26  ;;  %v400_v37 = vadd.f32 %v399_v33, %v398_v31  ;;  %v412_v38 = vadd.f32 %v411_v34, %v410_v32 }
  0xfb   :  { %v236_v39 = vadd.f32 %v400_v37, %v315_v26  ;;  %v252_v40 = vadd.f32 %v412_v38, %v315_v26  ;;  %v263_v41 = vmax.f32 %v233_v35, 0.0  ;;  %v267_v42 = vmax.f32 %v249_v36, 0.0 }
  0xfd   :  { %v264_v43 = vmax.f32 %v236_v39, 0.0  ;;  %v268_v44 = vmax.f32 %v252_v40, 0.0  ;;  %v401_v45 = vpop.f32.mrb[4].mxu0  ;;  %v413_v46 = vpop.f32.mrb[4].mxu1 }
  0xfe   :  { %v402_v47 = vpop.f32.mrb[5].mxu0  ;;  %v414_v48 = vpop.f32.mrb[5].mxu1 }
  0xff   :  { %v359_v49 = vpack.c.bf16 %v264_v43, %v263_v41  ;;  %v369_v50 = vpack.c.bf16 %v268_v44, %v267_v42  ;;  %v403_v51 = vadd.f32 %v402_v47, %v401_v45  ;;  %v415_v52 = vadd.f32 %v414_v48, %v413_v46  ;;  %v404_v53 = vpop.f32.mrb[6].mxu0  ;;  %v416_v54 = vpop.f32.mrb[6].mxu1 }
 0x100   :  { %v405_v55 = vpop.f32.mrb[7].mxu0  ;;  %v417_v56 = vpop.f32.mrb[7].mxu1 }
 0x101   :  { %360 = vst [vmem:[%s573_s3] sm:$0xff] %v359_v49   ;;  %377 = vst [vmem:[%s573_s3 + $0x10] sm:$0xff] %v369_v50   ;;  %v241_v57 = vadd.f32 %v403_v51, %v315_v26  ;;  %v257_v58 = vadd.f32 %v415_v52, %v315_v26  ;;  %v406_v59 = vadd.f32 %v405_v55, %v404_v53 }
 0x102   :  { %v418_v60 = vadd.f32 %v417_v56, %v416_v54 }
 0x103   :  { %v244_v61 = vadd.f32 %v406_v59, %v315_v26  ;;  %v265_v63 = vmax.f32 %v241_v57, 0.0  ;;  %v269_v0 = vmax.f32 %v257_v58, 0.0 }
 0x104   :  { %v260_v62 = vadd.f32 %v418_v60, %v315_v26 }
 0x105   :  { %v266_v1 = vmax.f32 %v244_v61, 0.0 }
 0x106   :  { %v270_v2 = vmax.f32 %v260_v62, 0.0 }
 0x107   :  { %v364_v3 = vpack.c.bf16 %v266_v1, %v265_v63 }
 0x108   :  { %v374_v4 = vpack.c.bf16 %v270_v2, %v269_v0 }
 0x109   :  { %376 = vst [vmem:[%s573_s3 + $0x8] sm:$0xff] %v364_v3  }
 0x10a   :  { %378 = vst [vmem:[%s573_s3 + $0x18] sm:$0xff] %v374_v4  }

// kernel: _rpn_device.5
= control target key start
LH: loop header
LB: loop body
LE: loop exit
PB: predicated region body
PF: predicated region fallthrough
CT: control target
= control target key end

     0   :  { %s355_s1 = inlined_call_operand.vmem [shape: bf16[128,128], index: 1, kind: input, shape index: {}]   ;;  %s356_s0 = inlined_call_operand.vmem [shape: bf16[64,128], index: 0, kind: input, shape index: {}]   ;;  %s357_s2 = inlined_call_operand.vmem [shape: f32[1,128], index: 2, kind: input, shape index: {}]   ;;  %s358_s3 = inlined_call_operand.vmem [shape: f32[64,128], index: 3, kind: output, shape index: {}]  }
   0x1   :  { %v260_v0 = vld [vmem:[%s355_s1] sm:$0xff]   ;;  %v261_v1 = vld [vmem:[%s355_s1 + $0x8] sm:$0xff]   ;;  %v262_v2 = vld [vmem:[%s355_s1 + $0x10] sm:$0xff]  }
   0x2   :  { %220 = vmatprep.subr.bf16.mxu0 %v260_v0  ;;  %244 = vmatprep.subr.bf16.mxu1 %v260_v0  ;;  %v263_v3 = vld [vmem:[%s355_s1 + $0x18] sm:$0xff]   ;;  %v268_v4 = vld [vmem:[%s356_s0] sm:$0xff]   ;;  %v269_v5 = vld [vmem:[%s356_s0 + $0x10] sm:$0xff]  }
   0x3   :  { %221 = vmatpush3.bf16.msra.mxu0 %v260_v0  ;;  %252 = vmatpush3.bf16.msra.mxu1 %v260_v0  ;;  %v264_v6 = vld [vmem:[%s355_s1 + $0x20] sm:$0xff]   ;;  %v265_v7 = vld [vmem:[%s355_s1 + $0x28] sm:$0xff]   ;;  %v266_v8 = vld [vmem:[%s355_s1 + $0x30] sm:$0xff]  }
   0x4   :  { %222 = vmatprep.subr.bf16.mxu0 %v261_v1  ;;  %245 = vmatprep.subr.bf16.mxu1 %v261_v1  ;;  %v267_v9 = vld [vmem:[%s355_s1 + $0x38] sm:$0xff]   ;;  %v270_v10 = vld [vmem:[%s356_s0 + $0x8] sm:$0xff]   ;;  %v195_v12 = vld [vmem:[%s357_s2] ss:$0 sm:$0xff] }
   0x5   :  { %236 = vmatprep.mubr.bf16.mxu0 %v268_v4  ;;  %240 = vmatprep.mubr.bf16.mxu1 %v269_v5  ;;  %v271_v11 = vld [vmem:[%s356_s0 + $0x18] sm:$0xff]  }
   0x7   :  { %223 = vmatpush3.bf16.msra.mxu0 %v261_v1  ;;  %253 = vmatpush3.bf16.msra.mxu1 %v261_v1 }
   0x8   :  { %224 = vmatprep.subr.bf16.mxu0 %v262_v2  ;;  %246 = vmatprep.subr.bf16.mxu1 %v262_v2 }
   0xb   :  { %225 = vmatpush3.bf16.msra.mxu0 %v262_v2  ;;  %254 = vmatpush3.bf16.msra.mxu1 %v262_v2 }
   0xc   :  { %226 = vmatprep.subr.bf16.mxu0 %v263_v3  ;;  %247 = vmatprep.subr.bf16.mxu1 %v263_v3 }
   0xf   :  { %227 = vmatpush3.bf16.msra.mxu0 %v263_v3  ;;  %255 = vmatpush3.bf16.msra.mxu1 %v263_v3 }
  0x10   :  { %228 = vmatprep.subr.bf16.mxu0 %v264_v6  ;;  %248 = vmatprep.subr.bf16.mxu1 %v264_v6 }
  0x13   :  { %229 = vmatpush3.bf16.msra.mxu0 %v264_v6  ;;  %256 = vmatpush3.bf16.msra.mxu1 %v264_v6 }
  0x14   :  { %230 = vmatprep.subr.bf16.mxu0 %v265_v7  ;;  %249 = vmatprep.subr.bf16.mxu1 %v265_v7 }
  0x17   :  { %231 = vmatpush3.bf16.msra.mxu0 %v265_v7  ;;  %257 = vmatpush3.bf16.msra.mxu1 %v265_v7 }
  0x18   :  { %232 = vmatprep.subr.bf16.mxu0 %v266_v8  ;;  %250 = vmatprep.subr.bf16.mxu1 %v266_v8 }
  0x1b   :  { %233 = vmatpush3.bf16.msra.mxu0 %v266_v8  ;;  %258 = vmatpush3.bf16.msra.mxu1 %v266_v8 }
  0x1c   :  { %234 = vmatprep.subr.bf16.mxu0 %v267_v9  ;;  %251 = vmatprep.subr.bf16.mxu1 %v267_v9 }
  0x1f   :  { %235 = vmatpush3.bf16.msra.mxu0 %v267_v9  ;;  %259 = vmatpush3.bf16.msra.mxu1 %v267_v9 }
  0x22   :  { %237 = vmatmul.mubr.bf16.vlgmr.msra.gmra.mrb[0].mxu0 %v270_v10  ;;  %241 = vmatmul.mubr.bf16.vlgmr.msra.gmra.mrb[0].mxu1 %v271_v11 }
  0xf5   :  { %v238_v13 = vpop.f32.mrb[0].mxu0  ;;  %v242_v14 = vpop.f32.mrb[0].mxu1 }
  0xf6   :  { %v161_v15 = vadd.f32 %v238_v13, %v195_v12  ;;  %v177_v16 = vadd.f32 %v242_v14, %v195_v12  ;;  %v152_v17 = vpop.f32.mrb[1].mxu0  ;;  %v168_v18 = vpop.f32.mrb[1].mxu1 }
  0xf7   :  { %v153_v19 = vadd.f32 %v195_v12, %v152_v17  ;;  %v169_v20 = vadd.f32 %v195_v12, %v168_v18  ;;  %v239_v21 = vpop.f32.mrb[2].mxu0  ;;  %v243_v22 = vpop.f32.mrb[2].mxu1 }
  0xf8   :  { %185 = vst [vmem:[%s358_s3 + $0x10] sm:$0xff] %v161_v15  ;;  %189 = vst [vmem:[%s358_s3 + $0x30] sm:$0xff] %v177_v16  ;;  %v164_v23 = vadd.f32 %v239_v21, %v195_v12  ;;  %v180_v24 = vadd.f32 %v243_v22, %v195_v12  ;;  %v155_v25 = vpop.f32.mrb[3].mxu0  ;;  %v171_v26 = vpop.f32.mrb[3].mxu1 }
  0xf9   :  { %183 = vst [vmem:[%s358_s3] sm:$0xff] %v153_v19  ;;  %187 = vst [vmem:[%s358_s3 + $0x20] sm:$0xff] %v169_v20  ;;  %v156_v27 = vadd.f32 %v195_v12, %v155_v25  ;;  %v172_v28 = vadd.f32 %v195_v12, %v171_v26 }
  0xfa   :  { %186 = vst [vmem:[%s358_s3 + $0x18] sm:$0xff] %v164_v23  ;;  %190 = vst [vmem:[%s358_s3 + $0x38] sm:$0xff] %v180_v24 }
  0xfb   :  { %184 = vst [vmem:[%s358_s3 + $0x8] sm:$0xff] %v156_v27  ;;  %188 = vst [vmem:[%s358_s3 + $0x28] sm:$0xff] %v172_v28 }

</bundles_post_ra>
